<compile_context>
chip_gen: v7x
topology: tpu7x:2x2x1
jax: 0.10.0
libtpu: 0.0.40
codegen_flags: <defaults>
</compile_context>

<pallas_src>
import functools

import jax
import jax.numpy as jnp
from jax.experimental import pallas as pl
from jax.experimental.pallas import tpu as pltpu


def _rubi_kernel(lq_ref, lr_ref, lab_ref,
                 loss_ref, loss_rubi_ref, loss_q_ref,
                 acc_rubi, acc_q,
                 *, n_rows, block_b, n_elems, question_loss_weight):
    i = pl.program_id(0)

    @pl.when(i == 0)
    def _():
        acc_rubi[...] = jnp.zeros_like(acc_rubi)
        acc_q[...] = jnp.zeros_like(acc_q)

    y = lab_ref[...].astype(jnp.float32)

    # Row-validity mask for the (possibly padded) last batch tile.
    row_ids = i * block_b + jax.lax.broadcasted_iota(jnp.int32, (block_b, 1), 0)
    row_valid = row_ids < n_rows                      # (block_b, 1) bool

    def bce_rowsum(x):
        # Numerically stable BCEWithLogits (same as PyTorch):
        #   max(x, 0) - x*y + log1p(exp(-|x|))
        per_elem = jnp.maximum(x, 0.0) - x * y + jnp.log1p(jnp.exp(-jnp.abs(x)))
        per_elem = jnp.where(row_valid, per_elem, 0.0)   # drop padded rows
        # Sublane-only reduce to a lane-shaped (1, C) running sum; the single
        # cross-lane reduce happens once in the final pl.when below.
        return jnp.sum(per_elem, axis=0, keepdims=True)

    acc_rubi[...] += bce_rowsum(lr_ref[...].astype(jnp.float32))
    acc_q[...] += bce_rowsum(lq_ref[...].astype(jnp.float32))

    @pl.when(i == pl.num_programs(0) - 1)
    def _():
        inv_n = jnp.float32(1.0 / n_elems)
        fusion_loss = jnp.sum(acc_rubi[...], axis=1, keepdims=True) * inv_n
        question_loss = jnp.sum(acc_q[...], axis=1, keepdims=True) * inv_n
        loss_rubi_ref[...] = fusion_loss
        loss_q_ref[...] = question_loss
        loss_ref[...] = fusion_loss + jnp.float32(question_loss_weight) * question_loss


def _choose_block_b(B, C, max_itemsize, target_bytes=1 << 20):
    """Batch-tile height targeting ~1 MiB per input block.

    3 inputs x 2 pipeline buffers x ~1 MiB ≈ 6 MiB, which fits the default
    scoped VMEM limit on every generation (including v7x's smaller VMEM)
    while being large enough to amortize the ~0.35 us/step pipeline overhead
    and approach the HBM roofline for this mem-bound reduction.
    """
    rows = target_bytes // max(1, C * max_itemsize)
    rows = max(32, (rows // 32) * 32)   # multiple of 32 covers f32/bf16/int8 tiling
    if rows >= B:
        return B                         # single grid step, block == full array
    return int(rows)


def rubi_criterion(net_out, labels, question_loss_weight=1.0, *, block_b=None):
    logits_q = net_out['logits_q']
    logits_rubi = net_out['logits_rubi']
    B, C = labels.shape
    assert logits_q.shape == (B, C) and logits_rubi.shape == (B, C)

    itemsize = max(jnp.dtype(logits_q.dtype).itemsize,
                   jnp.dtype(logits_rubi.dtype).itemsize,
                   jnp.dtype(labels.dtype).itemsize)
    if block_b is None:
        block_b = _choose_block_b(B, C, itemsize)
    block_b = min(block_b, B)
    grid_b = pl.cdiv(B, block_b)

    # TODO(synk): for extremely large C, add a lane-tile axis over C (multiple
    # of 128) instead of taking the full row per tile.

    n_elems = B * C
    kernel = functools.partial(
        _rubi_kernel,
        n_rows=B,
        block_b=block_b,
        n_elems=n_elems,
        question_loss_weight=float(question_loss_weight),
    )

    scalar_shape = jax.ShapeDtypeStruct((1, 1), jnp.float32)
    in_spec = pl.BlockSpec((block_b, C), lambda i: (i, 0))
    out_spec = pl.BlockSpec((1, 1), lambda i: (0, 0))

    loss, loss_rubi, loss_q = pl.pallas_call(
        kernel,
        out_shape=(scalar_shape, scalar_shape, scalar_shape),
        grid_spec=pltpu.PrefetchScalarGridSpec(
            num_scalar_prefetch=0,
            grid=(grid_b,),
            in_specs=[in_spec, in_spec, in_spec],
            out_specs=[out_spec, out_spec, out_spec],
            scratch_shapes=[pltpu.VMEM((1, C), jnp.float32),
                            pltpu.VMEM((1, C), jnp.float32)],
        ),
        compiler_params=pltpu.CompilerParams(
            dimension_semantics=("arbitrary",)),
    )(logits_q, logits_rubi, labels)

    return {
        'loss': loss[0, 0],
        'loss_rubi': loss_rubi[0, 0],
        'loss_q': loss_q[0, 0],
    }


def _reference(net_out, labels, question_loss_weight=1.0):
    def bce(x, y):
        x = x.astype(jnp.float32)
        y = y.astype(jnp.float32)
        return jnp.mean(jnp.maximum(x, 0.0) - x * y + jnp.log1p(jnp.exp(-jnp.abs(x))))

    fusion_loss = bce(net_out['logits_rubi'], labels)
    question_loss = bce(net_out['logits_q'], labels)
    return {
        'loss': fusion_loss + question_loss_weight * question_loss,
        'loss_rubi': fusion_loss,
        'loss_q': question_loss,
    }


if __name__ == "__main__":
    key = jax.random.PRNGKey(0)
    k1, k2, k3, k4, k5, k6 = jax.random.split(key, 6)

    # --- Case 1: tiny shapes -> collapses to a single grid step -------------
    B, C = 16, 256
    logits_q = jax.random.normal(k1, (B, C), dtype=jnp.float32)
    logits_rubi = jax.random.normal(k2, (B, C), dtype=jnp.float32)
    labels = jax.random.bernoulli(k3, 0.3, (B, C)).astype(jnp.float32)
    net_out = {'logits_q': logits_q, 'logits_rubi': logits_rubi}

    out = rubi_criterion(net_out, labels, question_loss_weight=0.5)
    jax.block_until_ready(out['loss'])
    ref = _reference(net_out, labels, question_loss_weight=0.5)
    for k in ('loss', 'loss_rubi', 'loss_q'):
        assert jnp.allclose(out[k], ref[k], rtol=1e-5, atol=1e-5), (k, out[k], ref[k])

    # --- Case 2: B not divisible by the tile -> masked partial last block,
    #             bf16 labels exercise narrower HBM-side dtypes. -------------
    B2, C2 = 200, 256
    logits_q2 = jax.random.normal(k4, (B2, C2), dtype=jnp.float32)
    logits_rubi2 = jax.random.normal(k5, (B2, C2), dtype=jnp.float32)
    labels2 = jax.random.bernoulli(k6, 0.3, (B2, C2))
    net_out2 = {'logits_q': logits_q2, 'logits_rubi': logits_rubi2}

    out2 = rubi_criterion(net_out2, labels2.astype(jnp.bfloat16),
                          question_loss_weight=1.0, block_b=64)
    jax.block_until_ready(out2['loss'])
    ref2 = _reference(net_out2, labels2.astype(jnp.float32),
                      question_loss_weight=1.0)
    for k in ('loss', 'loss_rubi', 'loss_q'):
        assert jnp.allclose(out2[k], ref2[k], rtol=1e-5, atol=1e-5), (k, out2[k], ref2[k])

    print("KERNEL_OK")
</pallas_src>

<mosaic_0001>
module attributes {stable_mosaic.version = 11 : i64} {
  func.func @_rubi_kernel(%arg0: i32, %arg1: memref<16x256xf32, #tpu.memory_space<vmem>>, %arg2: memref<16x256xf32, #tpu.memory_space<vmem>>, %arg3: memref<16x256xf32, #tpu.memory_space<vmem>>, %arg4: memref<1x1xf32, #tpu.memory_space<vmem>>, %arg5: memref<1x1xf32, #tpu.memory_space<vmem>>, %arg6: memref<1x1xf32, #tpu.memory_space<vmem>>, %arg7: memref<1x256xf32, #tpu.memory_space<vmem>>, %arg8: memref<1x256xf32, #tpu.memory_space<vmem>>) attributes {dimension_semantics = [#tpu.dimension_semantics<arbitrary>], iteration_bounds = array<i64: 1>, scalar_prefetch = 0 : i64, scratch_operands = 2 : i64, tpu.core_type = #tpu.core_type<tc>, window_params = [{transform_indices = @transform_0, window_bounds = array<i64: 16, 256>}, {transform_indices = @transform_1, window_bounds = array<i64: 16, 256>}, {transform_indices = @transform_2, window_bounds = array<i64: 16, 256>}, {pipeline_mode = #tpu.pipeline_mode<synchronous>, transform_indices = @transform_3, window_bounds = array<i64: 1, 1>}, {pipeline_mode = #tpu.pipeline_mode<synchronous>, transform_indices = @transform_4, window_bounds = array<i64: 1, 1>}, {pipeline_mode = #tpu.pipeline_mode<synchronous>, transform_indices = @transform_5, window_bounds = array<i64: 1, 1>}]} {
    %c0_i32 = arith.constant 0 : i32
    %0 = arith.cmpi eq, %arg0, %c0_i32 : i32
    %1 = arith.extui %0 : i1 to i32
    %c0_i32_0 = arith.constant 0 : i32
    %2 = arith.cmpi ne, %1, %c0_i32_0 : i32
    scf.if %2 {
      %cst_24 = arith.constant 0.000000e+00 : f32
      %53 = vector.broadcast %cst_24 : f32 to vector<1x256xf32>
      %c0_25 = arith.constant 0 : index
      %c0_26 = arith.constant 0 : index
      %54 = vector.load %arg7[%c0_25, %c0_26] : memref<1x256xf32, #tpu.memory_space<vmem>>, vector<1x256xf32>
      tpu.vector_store %arg7[%c0_25, %c0_26], %53 {strides = array<i32>} : memref<1x256xf32, #tpu.memory_space<vmem>>, vector<1x256xf32>,
      %cst_27 = arith.constant 0.000000e+00 : f32
      %55 = vector.broadcast %cst_27 : f32 to vector<1x256xf32>
      %c0_28 = arith.constant 0 : index
      %c0_29 = arith.constant 0 : index
      %56 = vector.load %arg8[%c0_28, %c0_29] : memref<1x256xf32, #tpu.memory_space<vmem>>, vector<1x256xf32>
      tpu.vector_store %arg8[%c0_28, %c0_29], %55 {strides = array<i32>} : memref<1x256xf32, #tpu.memory_space<vmem>>, vector<1x256xf32>,
    } else {
    }
    %c0 = arith.constant 0 : index
    %c0_1 = arith.constant 0 : index
    %3 = vector.load %arg3[%c0, %c0_1] : memref<16x256xf32, #tpu.memory_space<vmem>>, vector<16x256xf32>
    %c16_i32 = arith.constant 16 : i32
    %4 = arith.muli %arg0, %c16_i32 : i32
    %5 = tpu.iota {dimensions = array<i32: 0>} : vector<16x1xi32>
    %6 = vector.broadcast %4 : i32 to vector<16x1xi32>
    %7 = arith.addi %6, %5 : vector<16x1xi32>
    %c16_i32_2 = arith.constant 16 : i32
    %8 = vector.broadcast %c16_i32_2 : i32 to vector<16x1xi32>
    %9 = arith.cmpi slt, %7, %8 : vector<16x1xi32>
    %c0_3 = arith.constant 0 : index
    %c0_4 = arith.constant 0 : index
    %10 = vector.load %arg7[%c0_3, %c0_4] : memref<1x256xf32, #tpu.memory_space<vmem>>, vector<1x256xf32>
    %c0_5 = arith.constant 0 : index
    %c0_6 = arith.constant 0 : index
    %11 = vector.load %arg2[%c0_5, %c0_6] : memref<16x256xf32, #tpu.memory_space<vmem>>, vector<16x256xf32>
    %cst = arith.constant 0.000000e+00 : f32
    %12 = vector.broadcast %cst : f32 to vector<16x256xf32>
    %13 = arith.maximumf %11, %12 : vector<16x256xf32>
    %14 = arith.mulf %11, %3 : vector<16x256xf32>
    %15 = arith.subf %13, %14 : vector<16x256xf32>
    %16 = math.absf %11 : vector<16x256xf32>
    %cst_7 = arith.constant 0.000000e+00 : f32
    %17 = vector.broadcast %cst_7 : f32 to vector<16x256xf32>
    %18 = arith.subf %17, %16 : vector<16x256xf32>
    %19 = math.exp %18 : vector<16x256xf32>
    %20 = math.log1p %19 : vector<16x256xf32>
    %21 = arith.addf %15, %20 : vector<16x256xf32>
    %cst_8 = arith.constant 0.000000e+00 : f32
    %22 = vector.shape_cast %9 : vector<16x1xi1> to vector<16x1xi1>
    %23 = vector.broadcast %22 : vector<16x1xi1> to vector<16x256xi1>
    %24 = vector.broadcast %cst_8 : f32 to vector<16x256xf32>
    %25 = arith.select %23, %21, %24 : vector<16x256xi1>, vector<16x256xf32>
    %cst_9 = arith.constant dense<0.000000e+00> : vector<256xf32>
    %26 = vector.multi_reduction <add>, %25, %cst_9 [0] : vector<16x256xf32> to vector<256xf32>
    %27 = vector.shape_cast %26 : vector<256xf32> to vector<1x256xf32>
    %28 = arith.addf %10, %27 : vector<1x256xf32>
    %c0_10 = arith.constant 0 : index
    %c0_11 = arith.constant 0 : index
    %29 = vector.load %arg7[%c0_10, %c0_11] : memref<1x256xf32, #tpu.memory_space<vmem>>, vector<1x256xf32>
    tpu.vector_store %arg7[%c0_10, %c0_11], %28 {strides = array<i32>} : memref<1x256xf32, #tpu.memory_space<vmem>>, vector<1x256xf32>,
    %c0_12 = arith.constant 0 : index
    %c0_13 = arith.constant 0 : index
    %30 = vector.load %arg8[%c0_12, %c0_13] : memref<1x256xf32, #tpu.memory_space<vmem>>, vector<1x256xf32>
    %c0_14 = arith.constant 0 : index
    %c0_15 = arith.constant 0 : index
    %31 = vector.load %arg1[%c0_14, %c0_15] : memref<16x256xf32, #tpu.memory_space<vmem>>, vector<16x256xf32>
    %cst_16 = arith.constant 0.000000e+00 : f32
    %32 = vector.broadcast %cst_16 : f32 to vector<16x256xf32>
    %33 = arith.maximumf %31, %32 : vector<16x256xf32>
    %34 = arith.mulf %31, %3 : vector<16x256xf32>
    %35 = arith.subf %33, %34 : vector<16x256xf32>
    %36 = math.absf %31 : vector<16x256xf32>
    %cst_17 = arith.constant 0.000000e+00 : f32
    %37 = vector.broadcast %cst_17 : f32 to vector<16x256xf32>
    %38 = arith.subf %37, %36 : vector<16x256xf32>
    %39 = math.exp %38 : vector<16x256xf32>
    %40 = math.log1p %39 : vector<16x256xf32>
    %41 = arith.addf %35, %40 : vector<16x256xf32>
    %cst_18 = arith.constant 0.000000e+00 : f32
    %42 = vector.shape_cast %9 : vector<16x1xi1> to vector<16x1xi1>
    %43 = vector.broadcast %42 : vector<16x1xi1> to vector<16x256xi1>
    %44 = vector.broadcast %cst_18 : f32 to vector<16x256xf32>
    %45 = arith.select %43, %41, %44 : vector<16x256xi1>, vector<16x256xf32>
    %cst_19 = arith.constant dense<0.000000e+00> : vector<256xf32>
    %46 = vector.multi_reduction <add>, %45, %cst_19 [0] : vector<16x256xf32> to vector<256xf32>
    %47 = vector.shape_cast %46 : vector<256xf32> to vector<1x256xf32>
    %48 = arith.addf %30, %47 : vector<1x256xf32>
    %c0_20 = arith.constant 0 : index
    %c0_21 = arith.constant 0 : index
    %49 = vector.load %arg8[%c0_20, %c0_21] : memref<1x256xf32, #tpu.memory_space<vmem>>, vector<1x256xf32>
    tpu.vector_store %arg8[%c0_20, %c0_21], %48 {strides = array<i32>} : memref<1x256xf32, #tpu.memory_space<vmem>>, vector<1x256xf32>,
    %c0_i32_22 = arith.constant 0 : i32
    %50 = arith.cmpi eq, %arg0, %c0_i32_22 : i32
    %51 = arith.extui %50 : i1 to i32
    %c0_i32_23 = arith.constant 0 : i32
    %52 = arith.cmpi ne, %51, %c0_i32_23 : i32
    scf.if %52 {
      %c0_24 = arith.constant 0 : index
      %c0_25 = arith.constant 0 : index
      %53 = vector.load %arg7[%c0_24, %c0_25] : memref<1x256xf32, #tpu.memory_space<vmem>>, vector<1x256xf32>
      %cst_26 = arith.constant dense<0.000000e+00> : vector<1xf32>
      %54 = vector.multi_reduction <add>, %53, %cst_26 [1] : vector<1x256xf32> to vector<1xf32>
      %55 = vector.shape_cast %54 : vector<1xf32> to vector<1x1xf32>
      %cst_27 = arith.constant 2.44140625E-4 : f32
      %56 = vector.broadcast %cst_27 : f32 to vector<1x1xf32>
      %57 = arith.mulf %55, %56 : vector<1x1xf32>
      %c0_28 = arith.constant 0 : index
      %c0_29 = arith.constant 0 : index
      %58 = vector.load %arg8[%c0_28, %c0_29] : memref<1x256xf32, #tpu.memory_space<vmem>>, vector<1x256xf32>
      %cst_30 = arith.constant dense<0.000000e+00> : vector<1xf32>
      %59 = vector.multi_reduction <add>, %58, %cst_30 [1] : vector<1x256xf32> to vector<1xf32>
      %60 = vector.shape_cast %59 : vector<1xf32> to vector<1x1xf32>
      %cst_31 = arith.constant 2.44140625E-4 : f32
      %61 = vector.broadcast %cst_31 : f32 to vector<1x1xf32>
      %62 = arith.mulf %60, %61 : vector<1x1xf32>
      %c0_32 = arith.constant 0 : index
      %c0_33 = arith.constant 0 : index
      %63 = vector.load %arg5[%c0_32, %c0_33] : memref<1x1xf32, #tpu.memory_space<vmem>>, vector<1x1xf32>
      tpu.vector_store %arg5[%c0_32, %c0_33], %57 {strides = array<i32>} : memref<1x1xf32, #tpu.memory_space<vmem>>, vector<1x1xf32>,
      %c0_34 = arith.constant 0 : index
      %c0_35 = arith.constant 0 : index
      %64 = vector.load %arg6[%c0_34, %c0_35] : memref<1x1xf32, #tpu.memory_space<vmem>>, vector<1x1xf32>
      tpu.vector_store %arg6[%c0_34, %c0_35], %62 {strides = array<i32>} : memref<1x1xf32, #tpu.memory_space<vmem>>, vector<1x1xf32>,
      %cst_36 = arith.constant 5.000000e-01 : f32
      %65 = vector.broadcast %cst_36 : f32 to vector<1x1xf32>
      %66 = arith.mulf %65, %62 : vector<1x1xf32>
      %67 = arith.addf %57, %66 : vector<1x1xf32>
      %c0_37 = arith.constant 0 : index
      %c0_38 = arith.constant 0 : index
      %68 = vector.load %arg4[%c0_37, %c0_38] : memref<1x1xf32, #tpu.memory_space<vmem>>, vector<1x1xf32>
      tpu.vector_store %arg4[%c0_37, %c0_38], %67 {strides = array<i32>} : memref<1x1xf32, #tpu.memory_space<vmem>>, vector<1x1xf32>,
    } else {
    }
    return
  }
  func.func @transform_0(%arg0: i32) -> (i32, i32) {
    %c0_i32 = arith.constant 0 : i32
    %c0_i32_0 = arith.constant 0 : i32
    return %arg0, %c0_i32 : i32, i32
  }
  func.func @transform_1(%arg0: i32) -> (i32, i32) {
    %c0_i32 = arith.constant 0 : i32
    %c0_i32_0 = arith.constant 0 : i32
    return %arg0, %c0_i32 : i32, i32
  }
  func.func @transform_2(%arg0: i32) -> (i32, i32) {
    %c0_i32 = arith.constant 0 : i32
    %c0_i32_0 = arith.constant 0 : i32
    return %arg0, %c0_i32 : i32, i32
  }
  func.func @transform_3(%arg0: i32) -> (i32, i32) {
    %c0_i32 = arith.constant 0 : i32
    %c0_i32_0 = arith.constant 0 : i32
    %c0_i32_1 = arith.constant 0 : i32
    return %c0_i32, %c0_i32_0 : i32, i32
  }
  func.func @transform_4(%arg0: i32) -> (i32, i32) {
    %c0_i32 = arith.constant 0 : i32
    %c0_i32_0 = arith.constant 0 : i32
    %c0_i32_1 = arith.constant 0 : i32
    return %c0_i32, %c0_i32_0 : i32, i32
  }
  func.func @transform_5(%arg0: i32) -> (i32, i32) {
    %c0_i32 = arith.constant 0 : i32
    %c0_i32_0 = arith.constant 0 : i32
    %c0_i32_1 = arith.constant 0 : i32
    return %c0_i32, %c0_i32_0 : i32, i32
  }
}

</mosaic_0001>

<bundles_post_ra>
// kernel: tpu_custom_call.1
= control target key start
LH: loop header
LB: loop body
LE: loop exit
PB: predicated region body
PF: predicated region fallthrough
CT: control target
= control target key end

     0   :  { %11 = vsyncpa [#allocation5], 0  ;;  %s847_s0 = inlined_call_operand.hbm [shape: f32[16,256], index: 0, kind: input, shape index: {}]   ;;  %s848_s1 = inlined_call_operand.hbm [shape: f32[16,256], index: 1, kind: input, shape index: {}]   ;;  %s849_s2 = inlined_call_operand.hbm [shape: f32[16,256], index: 2, kind: input, shape index: {}]   ;;  %s850_s3 = inlined_call_operand.hbm [shape: f32[1,1], index: 3, kind: output, shape index: {0}]   ;;  %s851_s4 = inlined_call_operand.hbm [shape: f32[1,1], index: 4, kind: output, shape index: {1}]   ;;  %s852_s5 = inlined_call_operand.hbm [shape: f32[1,1], index: 5, kind: output, shape index: {2}]  }
   0x1   :  { %12 = vsyncpa [#allocation8], 0 }
   0x2   :  { %13 = vsyncpa [#allocation6], 0 }
   0x3   :  { %14 = vsyncpa [#allocation12], 0  ;;  %s584_s18 = smov [#allocation7]   ;;  %s585_s20 = smov [#allocation4]  }
   0x4   :  { %s32_s19 = sshll.u32 %s584_s18, 4  ;;  %s20_s21 = sshll.u32 %s585_s20, 4  ;;  %s33_s19 = int_to_ptr.vmem [resolvable:$true] %s32_s19  ;;  %s624_s21 = int_to_ptr.vmem [resolvable:$true] %s20_s21 }
   0x5   :  { %s444_s24 = scalar_lea.hbm %s848_s1, 512 }
   0x6   :  { %p445_p0 = scmp.ne.s32.totalorder %s848_s1, %s444_s24  ;;  %p448_p1 = scmp.lt.u32.totalorder %s444_s24, %s848_s1 }
   0x8   :  { %p450_p2 = pnand %p448_p1, %p445_p0 }
   0xa   :  { %453 = shalt.err (!%p450_p2)
}
   0xb   :  { %s454_s29 = scalar_lea.vmem %s33_s19, 512  ;;  %p459_p4 = scmp.lt.s32.totalorder %s33_s19, %s33_s19 }
   0xc   :  { %p455_p3 = scmp.ne.s32.totalorder %s33_s19, %s454_s29  ;;  %p460_p5 = scmp.lt.s32.totalorder %s454_s29, %s454_s29 }
   0xe   :  { %p461_p6 = por %p460_p5, %p459_p4 }
  0x10   :  { %p462_p7 = pnand %p461_p6, %p455_p3 }
  0x12   :  { %465 = shalt.err (!%p462_p7)
}
  0x13   :  { %s586_s30 = smov 256   ;;  %s587_s6 = smov 16  }
  0x14   :  { %38 = dma.hbm_to_vmem [thread:$0]  %s848_s1, 512, %s33_s19, [#allocation8], %s586_s30, %s586_s30, %s587_s6  }
  0x15   :  { %s466_s11 = scalar_lea.hbm %s847_s0, 512 }
  0x16   :  { %p467_p8 = scmp.ne.s32.totalorder %s847_s0, %s466_s11  ;;  %p470_p9 = scmp.lt.u32.totalorder %s466_s11, %s847_s0 }
  0x18   :  { %p472_p10 = pnand %p470_p9, %p467_p8 }
  0x1a   :  { %475 = shalt.err (!%p472_p10)
}
  0x1b   :  { %s476_s16 = scalar_lea.vmem %s624_s21, 512  ;;  %p481_p12 = scmp.lt.s32.totalorder %s624_s21, %s624_s21 }
  0x1c   :  { %p477_p11 = scmp.ne.s32.totalorder %s624_s21, %s476_s16  ;;  %p482_p13 = scmp.lt.s32.totalorder %s476_s16, %s476_s16 }
  0x1e   :  { %p483_p0 = por %p482_p13, %p481_p12 }
  0x20   :  { %p484_p1 = pnand %p483_p0, %p477_p11 }
  0x22   :  { %487 = shalt.err (!%p484_p1)
}
  0x23   :  { %26 = dma.hbm_to_vmem [thread:$0]  %s847_s0, 512, %s624_s21, [#allocation5], %s586_s30, %s586_s30, %s587_s6  }
  0x24   :  { %s588_s18 = smov [#allocation9]   ;;  %s488_s23 = scalar_lea.hbm %s849_s2, 512 }
  0x25   :  { %s44_s19 = sshll.u32 %s588_s18, 4  ;;  %p489_p2 = scmp.ne.s32.totalorder %s849_s2, %s488_s23  ;;  %s45_s19 = int_to_ptr.vmem [resolvable:$true] %s44_s19 }
  0x26   :  { %p492_p3 = scmp.lt.u32.totalorder %s488_s23, %s849_s2 }
  0x28   :  { %p494_p4 = pnand %p492_p3, %p489_p2 }
  0x2a   :  { %497 = shalt.err (!%p494_p4)
}
  0x2b   :  { %s498_s28 = scalar_lea.vmem %s45_s19, 512  ;;  %p503_p6 = scmp.lt.s32.totalorder %s45_s19, %s45_s19 }
  0x2c   :  { %p499_p5 = scmp.ne.s32.totalorder %s45_s19, %s498_s28  ;;  %p504_p7 = scmp.lt.s32.totalorder %s498_s28, %s498_s28 }
  0x2e   :  { %p505_p8 = por %p504_p7, %p503_p6 }
  0x30   :  { %p506_p9 = pnand %p505_p8, %p499_p5 }
  0x32   :  { %509 = shalt.err (!%p506_p9)
}
  0x33   :  { %50 = dma.hbm_to_vmem [thread:$0]  %s849_s2, 512, %s45_s19, [#allocation8], %s586_s30, %s586_s30, %s587_s6  }
  0x34   :  { %576 = dma.done.wait [#allocation5], 512  }
  0x35   :  { %577 = vsyncadd [#allocation5], 4294966784 }
  0x36   :  { %578 = dma.done.wait [#allocation8], 1024  }
  0x37   :  { %579 = vsyncadd [#allocation8], 4294966272  ;;  %v64_v0 = vlaneseq  ;;  %v589_v2 = vmov 0.0   ;;  %v84_v3 = vld [vmem:[#allocation7] sm:$0xff]  ;;  %v85_v4 = vld [vmem:[#allocation7 + $0x8] sm:$0xff]  ;;  %vm328_vm9 = vcmask 1040384  }
  0x38   :  { %v86_v5 = vld [vmem:[#allocation7 + $0x10] sm:$0xff]  ;;  %v87_v6 = vld [vmem:[#allocation7 + $0x18] sm:$0xff]  ;;  %v100_v7 = vand.u32 2147483647, %v84_v3  ;;  %v101_v8 = vand.u32 2147483647, %v85_v4 }
  0x39   :  { %vm677_vm0 = vcmp.lt.s32.totalorder %v64_v0, 256  ;;  %v102_v9 = vand.u32 2147483647, %v86_v5  ;;  %v103_v10 = vand.u32 2147483647, %v87_v6  ;;  %v685_v15 = vld [vmem:[#allocation4] sm:$0xff] }
  0x3a   :  { %69 = vst.msk [vmem:[#allocation3] sm:$0x3] %vm677_vm0, %v589_v2  ;;  %68 = vst.msk [vmem:[#allocation2] sm:$0x3] %vm677_vm0, %v589_v2  ;;  %v104_v11 = vsub.f32 0.0, %v100_v7  ;;  %v105_v12 = vsub.f32 0.0, %v101_v8 }
  0x3b   :  { %v106_v13 = vsub.f32 0.0, %v102_v9  ;;  %v107_v14 = vsub.f32 0.0, %v103_v10  ;;  %v687_v18 = vld [vmem:[#allocation4 + $0x8] sm:$0xff]  ;;  %v689_v21 = vld [vmem:[#allocation4 + $0x10] sm:$0xff]  ;;  %v691_v22 = vld [vmem:[#allocation4 + $0x18] sm:$0xff]  ;;  %v88_v38 = vmax.f32 %v84_v3, 0.0 }
  0x3c   :  { %v108_v16 = vmul.f32 1.442695, %v104_v11  ;;  %v110_v17 = vmul.f32 1.442695, %v105_v12  ;;  %v219_v23 = vand.u32 2147483647, %v685_v15 }
  0x3d   :  { %v112_v19 = vmul.f32 1.442695, %v106_v13  ;;  %v114_v20 = vmul.f32 1.442695, %v107_v14  ;;  %v220_v24 = vand.u32 2147483647, %v687_v18 }
  0x3e   :  { %412 = vpow2.f32 %v108_v16  ;;  %v221_v25 = vand.u32 2147483647, %v689_v21  ;;  %v222_v26 = vand.u32 2147483647, %v691_v22  ;;  %v223_v27 = vsub.f32 0.0, %v219_v23  ;;  %v70_v33 = vld [vmem:[#allocation9] sm:$0xff] }
  0x3f   :  { %414 = vpow2.f32 %v110_v17  ;;  %v224_v28 = vsub.f32 0.0, %v220_v24  ;;  %v71_v36 = vld [vmem:[#allocation9 + $0x8] sm:$0xff]  ;;  %v72_v37 = vld [vmem:[#allocation9 + $0x10] sm:$0xff]  ;;  %v89_v39 = vmax.f32 %v85_v4, 0.0  ;;  %v92_v40 = vmul.f32 %v84_v3, %v70_v33  ;;  %v73_v41 = vld [vmem:[#allocation9 + $0x18] sm:$0xff]  ;;  %s591_s2 = smov [#allocation11]  }
  0x40   :  { %416 = vpow2.f32 %v112_v19  ;;  %v225_v29 = vsub.f32 0.0, %v221_v25  ;;  %v226_v30 = vsub.f32 0.0, %v222_v26  ;;  %v227_v31 = vmul.f32 1.442695, %v223_v27  ;;  %s375_s29 = sshll.u32 %s591_s2, 4  ;;  %s592_s30 = smov [#allocation13]   ;;  %s376_s29 = int_to_ptr.vmem [resolvable:$true] %s375_s29 }
  0x41   :  { %418 = vpow2.f32 %v114_v20  ;;  %v229_v32 = vmul.f32 1.442695, %v224_v28  ;;  %v90_v42 = vmax.f32 %v86_v5, 0.0  ;;  %v93_v43 = vmul.f32 %v85_v4, %v71_v36  ;;  %s385_s6 = sshll.u32 %s592_s30, 4  ;;  %s593_s7 = smov [#allocation10]   ;;  %s793_s6 = int_to_ptr.vmem [resolvable:$true] %s385_s6 }
  0x42   :  { %420 = vpow2.f32 %v227_v31  ;;  %v231_v34 = vmul.f32 1.442695, %v225_v29  ;;  %v233_v35 = vmul.f32 1.442695, %v226_v30  ;;  %v94_v44 = vmul.f32 %v86_v5, %v72_v37  ;;  %s365_s8 = sshll.u32 %s593_s7, 4  ;;  %s510_s9 = scalar_lea.vmem %s376_s29, 16  ;;  %s796_s8 = int_to_ptr.vmem [resolvable:$true] %s365_s8 }
  0x43   :  { %422 = vpow2.f32 %v229_v32  ;;  %v91_v45 = vmax.f32 %v87_v6, 0.0  ;;  %v95_v46 = vmul.f32 %v87_v6, %v73_v41  ;;  %v697_v51 = vsub.f32 %v88_v38, %v92_v40  ;;  %p511_p10 = scmp.ne.s32.totalorder %s376_s29, %s510_s9  ;;  %s514_s10 = scalar_lea.vmem %s376_s29, 32 }
  0x44   :  { %424 = vpow2.f32 %v231_v34  ;;  %v699_v52 = vsub.f32 %v89_v39, %v93_v43  ;;  %v701_v53 = vsub.f32 %v90_v42, %v94_v44  ;;  %v207_v60 = vmax.f32 %v685_v15, 0.0  ;;  %p515_p11 = scmp.lt.s32.totalorder %s376_s29, %s376_s29  ;;  %p516_p12 = scmp.lt.s32.totalorder %s514_s10, %s510_s9 }
  0x45   :  { %426 = vpow2.f32 %v233_v35  ;;  %v703_v56 = vsub.f32 %v91_v45, %v95_v46  ;;  %v208_v61 = vmax.f32 %v687_v18, 0.0  ;;  %v209_v2 = vmax.f32 %v689_v21, 0.0 }
  0x46   :  { %v210_v5 = vmax.f32 %v691_v22, 0.0  ;;  %v211_v6 = vmul.f32 %v685_v15, %v70_v33  ;;  %v212_v7 = vmul.f32 %v687_v18, %v71_v36  ;;  %v213_v16 = vmul.f32 %v689_v21, %v72_v37  ;;  %p517_p13 = por %p516_p12, %p515_p11 }
  0x47   :  { %v720_v17 = vmul.f32 %v691_v22, %v73_v41  ;;  %vm353_vm10 = vcmask 0  }
  0x48   :  { %v413_v47 = vpop.eup %412  ;;  %v725_v24 = vsub.f32 %v207_v60, %v211_v6  ;;  %v216_v44 = vsub.f32 %v208_v61, %v212_v7  ;;  %p518_p0 = pnand %p517_p13, %p511_p10 }
  0x49   :  { %v415_v48 = vpop.eup %414  ;;  %v116_v49 = vadd.f32 1.0, %v413_v47  ;;  %v119_v57 = vmul.f32 -0.5, %v413_v47  ;;  %v122_v4 = vand.u32 2147483647, %v413_v47 }
  0x4a   :  { %v417_v50 = vpop.eup %416  ;;  %v125_v54 = vadd.f32 1.0, %v415_v48  ;;  %v128_v59 = vmul.f32 -0.5, %v415_v48  ;;  %v131_v10 = vand.u32 2147483647, %v415_v48 }
  0x4b   :  { %v419_v55 = vpop.eup %418  ;;  %428 = vlog2.f32 %v116_v49  ;;  %v134_v58 = vadd.f32 1.0, %v417_v50  ;;  %v137_v62 = vmul.f32 -0.5, %v417_v50  ;;  %v120_v9 = vadd.f32 1.0, %v119_v57 }
  0x4c   :  { %430 = vlog2.f32 %v125_v54  ;;  %v143_v63 = vadd.f32 1.0, %v419_v55  ;;  %v708_v3 = vpop.eup %420  ;;  %v129_v13 = vadd.f32 1.0, %v128_v59  ;;  %v146_v14 = vmul.f32 -0.5, %v419_v55 }
  0x4d   :  { %432 = vlog2.f32 %v134_v58  ;;  %v713_v8 = vpop.eup %422  ;;  %v235_v11 = vadd.f32 1.0, %v708_v3  ;;  %v138_v15 = vadd.f32 1.0, %v137_v62  ;;  %v140_v18 = vand.u32 2147483647, %v417_v50 }
  0x4e   :  { %434 = vlog2.f32 %v143_v63  ;;  %v716_v12 = vpop.eup %424  ;;  %v244_v20 = vadd.f32 1.0, %v713_v8  ;;  %v149_v23 = vand.u32 2147483647, %v419_v55  ;;  %v238_v25 = vmul.f32 -0.5, %v708_v3 }
  0x4f   :  { %v722_v19 = vpop.eup %426  ;;  %436 = vlog2.f32 %v235_v11  ;;  %v253_v26 = vadd.f32 1.0, %v716_v12  ;;  %v121_v27 = vmul.f32 %v413_v47, %v120_v9  ;;  %vm729_vm1 = vcmp.lt.f32.partialorder %v122_v4, 0.0004427343 }
  0x50   :  { %vm733_vm2 = vcmp.lt.f32.partialorder %v131_v10, 0.0004427343  ;;  %438 = vlog2.f32 %v244_v20  ;;  %v147_v30 = vadd.f32 1.0, %v146_v14  ;;  %v247_v31 = vmul.f32 -0.5, %v713_v8 }
  0x51   :  { %440 = vlog2.f32 %v253_v26  ;;  %v262_v32 = vadd.f32 1.0, %v722_v19  ;;  %v130_v34 = vmul.f32 %v415_v48, %v129_v13  ;;  %v139_v35 = vmul.f32 %v417_v50, %v138_v15 }
  0x52   :  { %vm739_vm3 = vcmp.lt.f32.partialorder %v140_v18, 0.0004427343  ;;  %v256_v37 = vmul.f32 -0.5, %v716_v12  ;;  %vm744_vm4 = vcmp.lt.f32.partialorder %v149_v23, 0.0004427343  ;;  %v239_v41 = vadd.f32 1.0, %v238_v25 }
  0x53   :  { %442 = vlog2.f32 %v262_v32  ;;  %v241_v45 = vand.u32 2147483647, %v708_v3  ;;  %v265_v46 = vmul.f32 -0.5, %v722_v19  ;;  %v148_v49 = vmul.f32 %v419_v55, %v147_v30 }
  0x54   :  { %v248_v50 = vadd.f32 1.0, %v247_v31  ;;  %v250_v59 = vand.u32 2147483647, %v713_v8  ;;  %v257_v60 = vadd.f32 1.0, %v256_v37  ;;  %v240_v63 = vmul.f32 %v708_v3, %v239_v41 }
  0x55   :  { %v429_v33 = vpop.eup %428  ;;  %v259_v4 = vand.u32 2147483647, %v716_v12  ;;  %vm762_vm5 = vcmp.lt.f32.partialorder %v241_v45, 0.0004427343  ;;  %v268_v3 = vand.u32 2147483647, %v722_v19  ;;  %v217_v23 = vsub.f32 %v209_v2, %v213_v16 }
  0x56   :  { %v431_v38 = vpop.eup %430  ;;  %v118_v39 = vmul.f32 0.6931472, %v429_v33  ;;  %v249_v13 = vmul.f32 %v713_v8, %v248_v50  ;;  %vm771_vm6 = vcmp.lt.f32.partialorder %v250_v59, 0.0004427343  ;;  %v218_v30 = vsub.f32 %v210_v5, %v720_v17 }
  0x57   :  { %v433_v42 = vpop.eup %432  ;;  %v127_v43 = vmul.f32 0.6931472, %v431_v38  ;;  %vm260_vm7 = vcmp.lt.f32.partialorder %v259_v4, 0.0004427343  ;;  %vm269_vm8 = vcmp.lt.f32.partialorder %v268_v3, 0.0004427343 }
  0x58   :  { %v124_v47 = vsel %vm729_vm1, %v121_v27, %v118_v39  ;;  %v136_v48 = vmul.f32 0.6931472, %v433_v42  ;;  %v435_v54 = vpop.eup %434  ;;  %v590_v5 = vmov 1966171168  }
  0x59   :  { %v133_v57 = vsel %vm733_vm2, %v130_v34, %v127_v43  ;;  %v152_v58 = vadd.f32 %v124_v47, %v697_v51  ;;  %v145_v62 = vmul.f32 0.6931472, %v435_v54  ;;  %v437_v6 = vpop.eup %436  ;;  %v266_v51 = vadd.f32 1.0, %v265_v46 }
  0x5a   :  { %v142_v61 = vsel %vm739_vm3, %v139_v35, %v136_v48  ;;  %v153_v55 = vadd.f32 %v133_v57, %v699_v52  ;;  %v237_v11 = vmul.f32 0.6931472, %v437_v6  ;;  %v439_v14 = vpop.eup %438  ;;  %v182_v17 = vunpack.c.l.s4 %v590_v5 }
  0x5b   :  { %v154_v7 = vadd.f32 %v142_v61, %v701_v53  ;;  %v151_v10 = vsel %vm744_vm4, %v148_v49, %v145_v62  ;;  %v258_v53 = vmul.f32 %v716_v12, %v257_v60  ;;  %v441_v20 = vpop.eup %440  ;;  %v246_v8 = vmul.f32 0.6931472, %v439_v14 }
  0x5c   :  { %v155_v15 = vadd.f32 %v151_v10, %v703_v56  ;;  %v243_v25 = vsel %vm762_vm5, %v240_v63, %v237_v11  ;;  %v255_v28 = vmul.f32 0.6931472, %v441_v20  ;;  %v267_v56 = vmul.f32 %v722_v19, %v266_v51  ;;  %v202_v11 = vld [vmem:[#allocation3] sm:$0x3] }
  0x5d   :  { %v164_v18 = vadd.f32 %v154_v7, %v152_v58  ;;  %v443_v29 = vpop.eup %442  ;;  %v252_v12 = vsel %vm771_vm6, %v249_v13, %v246_v8  ;;  %v271_v21 = vadd.f32 %v243_v25, %v725_v24  ;;  %v183_v48 = vunpack.c.0.s8 %v182_v17 }
  0x5e   :  { %v171_v27 = vadd.f32 %v155_v15, %v153_v55  ;;  %v261_v31 = vsel %vm260_vm7, %v258_v53, %v255_v28  ;;  %v264_v32 = vmul.f32 0.6931472, %v443_v29  ;;  %v272_v33 = vadd.f32 %v252_v12, %v216_v44  ;;  %v83_v55 = vld [vmem:[#allocation2] sm:$0x3] }
  0x5f   :  { %v165_v26 = vrot.slane %v164_v18, 4  ;;  %v273_v34 = vadd.f32 %v261_v31, %v217_v23  ;;  %v185_v44 = vshrl.u32 %v64_v0, 7 }
  0x60   :  { %v172_v16 = vrot.slane %v171_v27, 4  ;;  %v270_v19 = vsel %vm269_vm8, %v267_v56, %v264_v32 }
  0x61   :  { %v166_v2 = vadd.f32 %v165_v26, %v164_v18  ;;  %v274_v37 = vadd.f32 %v270_v19, %v218_v30  ;;  %v279_v38 = vadd.f32 %v273_v34, %v271_v21  ;;  %v186_v60 = vsub.s32 %v183_v48, %v185_v44 }
  0x62   :  { %v173_v36 = vadd.f32 %v172_v16, %v171_v27  ;;  %v320_v15 = vsub.s32 0, %v185_v44  ;;  %v324_v18 = vsub.s32 1, %v185_v44 }
  0x63   :  { %v167_v35 = vrot.slane %v166_v2, 2  ;;  %v280_v40 = vrot.slane %v279_v38, 4  ;;  %v286_v41 = vadd.f32 %v274_v37, %v272_v33 }
  0x64   :  { %v174_v22 = vrot.slane %v173_v36, 2 }
  0x65   :  { %v168_v39 = vadd.f32 %v167_v35, %v166_v2  ;;  %v281_v24 = vadd.f32 %v280_v40, %v279_v38  ;;  %v287_v45 = vrot.slane %v286_v41, 4 }
  0x66   :  { %v175_v43 = vadd.f32 %v174_v22, %v173_v36 }
  0x67   :  { %v169_v42 = vrot.slane %v168_v39, 1  ;;  %v282_v49 = vrot.slane %v281_v24, 2  ;;  %v288_v50 = vadd.f32 %v287_v45, %v286_v41 }
  0x68   :  { %v176_v47 = vrot.slane %v175_v43, 1 }
  0x69   :  { %v170_v46 = vadd.f32 %v169_v42, %v168_v39  ;;  %v283_v57 = vadd.f32 %v282_v49, %v281_v24  ;;  %v289_v58 = vrot.slane %v288_v50, 2 }
  0x6a   :  { %v177_v54 = vadd.f32 %v176_v47, %v175_v43 }
  0x6b   :  { %v284_v61 = vrot.slane %v283_v57, 1  ;;  %v290_v62 = vadd.f32 %v289_v58, %v288_v50 }
  0x6c   :  { %v180_v59 = vcombine.low %v170_v46, %v177_v54 }
  0x6d   :  { %v285_v4 = vadd.f32 %v284_v61, %v283_v57  ;;  %v291_v6 = vrot.slane %v290_v62, 1 }
  0x6e   :  { %v187_v63 = vrot.slane %v180_v59, %v186_v60 }
  0x6f   :  { %v292_v9 = vadd.f32 %v291_v6, %v290_v62 }
  0x70   :  { %v194_v7 = vrot.slane %v187_v63, %v186_v60 }
  0x71   :  { %v295_v10 = vcombine.low %v285_v4, %v292_v9 }
  0x72   :  { %v196_v51 = vadd.f32 %v194_v7, %v83_v55 }
  0x73   :  { %v302_v0 = vrot.slane %v295_v10, %v186_v60 }
  0x74   :  { %201 = vst.msk [vmem:[#allocation2] sm:$0x3] %vm677_vm0, %v196_v51 }
  0x75   :  { %v309_v13 = vrot.slane %v302_v0, %v186_v60 }
  0x77   :  { %v311_v3 = vadd.f32 %v309_v13, %v202_v11 }
  0x79   :  { %312 = vst.msk [vmem:[#allocation3] sm:$0x3] %vm677_vm0, %v311_v3 }
  0x7b   :  { %v316_v14 = vld [vmem:[#allocation2] sm:$0x3] }
  0x7c   :  { %v321_v52 = vrot.slane %v316_v14, %v320_v15  ;;  %v325_v53 = vrot.slane %v316_v14, %v324_v18 }
  0x7e   :  { %v329_v27 = vsel %vm328_vm9, %v321_v52, 0.0  ;;  %v330_v28 = vsel %vm328_vm9, %v325_v53, 0.0 }
  0x7f   :  { %v331_v29 = vadd.f32 %v330_v28, %v329_v27 }
  0x80   :  { %v335_v20 = vld [vmem:[#allocation3] sm:$0x3] }
  0x81   :  { %v340_v23 = vrot.slane %v335_v20, %v320_v15  ;;  %v344_v25 = vrot.slane %v335_v20, %v324_v18 }
  0x83   :  { %v347_v8 = vsel %vm328_vm9, %v340_v23, 0.0  ;;  %v348_v26 = vsel %vm328_vm9, %v344_v25, 0.0 }
  0x84   :  { %v349_v56 = vadd.f32 %v348_v26, %v347_v8 }
  0x86   :  { %350 = vadd.xlane.f32.xlu0 %v349_v56 }
  0x8a   :  { %332 = vadd.xlane.f32.xlu0 %v331_v29 }
 0x113   :  { %v351_v30 = vpop.xlane.xlu0 %350 }
 0x114   :  { %v352_v1 = vmul.f32 0.00024414063, %v351_v30 }
 0x116   :  { %355 = vst.msk [vmem:[#allocation13] sm:$0x1] %vm353_vm10, %v352_v1  ;;  %v356_v21 = vmul.f32 0.5, %v352_v1 }
 0x117   :  { %v333_v12 = vpop.xlane.xlu0 %332 }
 0x118   :  { %v334_v2 = vmul.f32 0.00024414063, %v333_v12 }
 0x11a   :  { %v357_v16 = vadd.f32 %v356_v21, %v334_v2  ;;  %354 = vst.msk [vmem:[#allocation11] sm:$0x1] %vm353_vm10, %v334_v2 }
 0x11b   :  { %521 = shalt.err (!%p518_p0)
}
 0x11c   :  { %s522_s13 = scalar_lea.hbm %s851_s4, 16 }
 0x11d   :  { %p523_p1 = scmp.ne.s32.totalorder %s851_s4, %s522_s13  ;;  %p526_p2 = scmp.lt.u32.totalorder %s522_s13, %s851_s4 }
 0x11f   :  { %p528_p3 = pnand %p526_p2, %p523_p1 }
 0x121   :  { %531 = shalt.err (!%p528_p3)
}
 0x122   :  { %378 = dma.vmem_to_hbm [thread:$0]  %s376_s29, 16, %s851_s4, [#allocation12]   ;;  %358 = vst.msk [vmem:[#allocation10] sm:$0x1] %vm353_vm10, %v357_v16 }
 0x123   :  { %s532_s19 = scalar_lea.vmem %s793_s6, 16  ;;  %s536_s20 = scalar_lea.vmem %s793_s6, 32 }
 0x124   :  { %p533_p4 = scmp.ne.s32.totalorder %s793_s6, %s532_s19  ;;  %p537_p5 = scmp.lt.s32.totalorder %s793_s6, %s793_s6 }
 0x125   :  { %p538_p6 = scmp.lt.s32.totalorder %s536_s20, %s532_s19 }
 0x127   :  { %p539_p7 = por %p538_p6, %p537_p5 }
 0x129   :  { %p540_p8 = pnand %p539_p7, %p533_p4 }
 0x12b   :  { %543 = shalt.err (!%p540_p8)
}
 0x12c   :  { %s544_s24 = scalar_lea.hbm %s852_s5, 16 }
 0x12d   :  { %p545_p9 = scmp.ne.s32.totalorder %s852_s5, %s544_s24  ;;  %p548_p10 = scmp.lt.u32.totalorder %s544_s24, %s852_s5 }
 0x12f   :  { %p550_p11 = pnand %p548_p10, %p545_p9 }
 0x131   :  { %553 = shalt.err (!%p550_p11)
}
 0x132   :  { %388 = dma.vmem_to_hbm [thread:$0]  %s793_s6, 16, %s852_s5, [#allocation12]  }
 0x133   :  { %s554_s21 = scalar_lea.vmem %s796_s8, 16  ;;  %s558_s2 = scalar_lea.vmem %s796_s8, 32 }
 0x134   :  { %p555_p12 = scmp.ne.s32.totalorder %s796_s8, %s554_s21  ;;  %p559_p13 = scmp.lt.s32.totalorder %s796_s8, %s796_s8 }
 0x135   :  { %p560_p0 = scmp.lt.s32.totalorder %s558_s2, %s554_s21 }
 0x137   :  { %p561_p1 = por %p560_p0, %p559_p13 }
 0x139   :  { %p562_p2 = pnand %p561_p1, %p555_p12 }
 0x13b   :  { %565 = shalt.err (!%p562_p2)
}
 0x13c   :  { %s566_s7 = scalar_lea.hbm %s850_s3, 16 }
 0x13d   :  { %p567_p3 = scmp.ne.s32.totalorder %s850_s3, %s566_s7  ;;  %p570_p4 = scmp.lt.u32.totalorder %s566_s7, %s850_s3 }
 0x13f   :  { %p572_p5 = pnand %p570_p4, %p567_p3 }
 0x141   :  { %575 = shalt.err (!%p572_p5)
}
 0x142   :  { %368 = dma.vmem_to_hbm [thread:$0]  %s796_s8, 16, %s850_s3, [#allocation6]  }
 0x143   :  { %580 = dma.done.wait [#allocation6], 16  }
 0x144   :  { %581 = vsyncadd [#allocation6], 4294967280 }
 0x145   :  { %582 = dma.done.wait [#allocation12], 32  }
 0x146   :  { %583 = vsyncadd [#allocation12], 4294967264 }
 0x147   :  { %398 = vsyncpa [#allocation5], 1 }
 0x148   :  { %399 = vsyncpa [#allocation8], 1 }
 0x149   :  { %400 = vsyncpa [#allocation6], 1 }
 0x14a   :  { %401 = vsyncpa [#allocation12], 1 }

</bundles_post_ra>
